<compile_context>
chip_gen: v6e
topology: v6e:2x2x1
jax: 0.10.0
libtpu: 0.0.40
codegen_flags: <defaults>
</compile_context>

<pallas_src>
import math
from functools import partial

import jax
import jax.numpy as jnp
from jax.experimental import pallas as pl
from jax.experimental.pallas import tpu as pltpu

LANES = 128            # padded width of every hidden layer
ONE_LANE = LANES - 1   # spare lane that carries the constant-1 activation (bias folding)


def _round_up(n, m):
    return ((n + m - 1) // m) * m


def _encoder_kernel(xa_ref, w1_ref, w_ref, out_ref, *, latent_dim):
    """Fused MLP VAE encoder block.

    xa_ref : (tB, aug)        f32  augmented input [eps(L) | x | 1 | 0-pad]
    w1_ref : (aug, 128)       f32  L1 weight (zero-concat dropped, bias folded in)
    w_ref  : (3, 128, 128)    f32  [L2 | L3 | fused mu/logvar head], biases folded in
    out_ref: (tB, 3L)         f32  [mu | logvar | z]
    """
    L = latent_dim
    xa = xa_ref[...]
    # Bias is carried by the constant-1 column of xa / constant-1 lane (127) of h,
    # so each layer is a single MXU pass followed by ReLU (lane 127 stays 1).
    h = jnp.maximum(jnp.dot(xa, w1_ref[...], preferred_element_type=jnp.float32), 0.0)
    h = jnp.maximum(jnp.dot(h, w_ref[0], preferred_element_type=jnp.float32), 0.0)
    h = jnp.maximum(jnp.dot(h, w_ref[1], preferred_element_type=jnp.float32), 0.0)
    # Fused heads: lanes [0:L) = mu, [L:2L) = logvar, rest zero. No ReLU.
    head = jnp.dot(h, w_ref[2], preferred_element_type=jnp.float32)

    mu = head[:, :L]
    lv = head[:, L:2 * L]
    eps = xa[:, :L]
    z = jnp.exp(0.5 * lv) * eps + mu          # EUP exp on L lanes only

    out_ref[:, :2 * L] = head[:, :2 * L]       # [mu | logvar]
    out_ref[:, 2 * L:] = z                     # [z]


def pack_params(params, *, input_size, hidden_dim, latent_dim):
    """One-time packing of the 10 Linear params into 2 lane-dense buffers
    (biases folded into the weights via the constant-1 lane)."""
    (w1, b1, w2, b2, w3, b3, wmu, bmu, wlv, blv) = params
    input_dim = input_size + hidden_dim
    d1, d2, d3 = input_dim // 2, input_dim // 4, input_dim // 8
    L = latent_dim
    # Lane-packing assumptions: fail loudly instead of silently corrupting lanes.
    assert max(d1, d2, d3, 2 * L) < ONE_LANE, "hidden/head widths must leave lane 127 free"
    assert 3 * L <= LANES, "[mu|logvar|z] output packing must fit in 128 lanes"

    one_col = L + input_size                 # column of the constant-1 in the augmented input
    aug = _round_up(one_col + 1, 8)          # pad K to a sublane multiple
    f32 = jnp.float32

    # L1: zero half of torch.cat([x, zeros]) contributes nothing -> only the first
    # input_size rows of w1 kept; eps rows are zero; last real row carries b1 and
    # sets the constant-1 output lane.
    w1_p = jnp.zeros((aug, LANES), f32)
    w1_p = w1_p.at[L:L + input_size, :d1].set(w1[:input_size, :].astype(f32))
    w1_p = w1_p.at[one_col, :d1].set(b1.reshape(-1).astype(f32))
    w1_p = w1_p.at[one_col, ONE_LANE].set(1.0)

    w_rest = jnp.zeros((3, LANES, LANES), f32)
    # L2
    w_rest = w_rest.at[0, :d1, :d2].set(w2.astype(f32))
    w_rest = w_rest.at[0, ONE_LANE, :d2].set(b2.reshape(-1).astype(f32))
    w_rest = w_rest.at[0, ONE_LANE, ONE_LANE].set(1.0)
    # L3
    w_rest = w_rest.at[1, :d2, :d3].set(w3.astype(f32))
    w_rest = w_rest.at[1, ONE_LANE, :d3].set(b3.reshape(-1).astype(f32))
    w_rest = w_rest.at[1, ONE_LANE, ONE_LANE].set(1.0)
    # Fused mu/logvar head (no ReLU, no need to propagate the constant-1 further)
    w_rest = w_rest.at[2, :d3, :L].set(wmu.astype(f32))
    w_rest = w_rest.at[2, :d3, L:2 * L].set(wlv.astype(f32))
    w_rest = w_rest.at[2, ONE_LANE, :L].set(bmu.reshape(-1).astype(f32))
    w_rest = w_rest.at[2, ONE_LANE, L:2 * L].set(blv.reshape(-1).astype(f32))
    return w1_p, w_rest


def _choose_batch_tile(B):
    """Pick a batch tile: multiple of 8 (sublane rule), capped at 2048 (VMEM use
    stays < ~2 MiB), and for B>=16 split into >=2 blocks so the parallel grid
    axis can shard across both v7x TensorCores."""
    CAP = 2048
    B8 = _round_up(B, 8)
    if B8 <= 8:
        return B8, B8                        # too small to split into two 8-row blocks
    half = _round_up((B8 + 1) // 2, 8)       # ~half the batch -> >= 2 blocks
    block_b = min(CAP, half)
    B_pad = _round_up(B8, block_b)
    return block_b, B_pad


def encoder_forward(x, eps, packed, *, latent_dim):
    """x: (B, input_size) f32; eps: (B, latent_dim) N(0,1) noise.

    Returns (z, logvar, mu), each (B, latent_dim) -- matches the PyTorch module."""
    w1_p, w_rest = packed
    B, input_size = x.shape
    L = latent_dim
    aug = w1_p.shape[0]
    one_col = L + input_size
    pad_cols = aug - (one_col + 1)

    # Augmented input [eps | x | 1 | 0-pad]; single input stream, bias via the 1-column.
    xa = jnp.concatenate(
        [eps.astype(jnp.float32), x.astype(jnp.float32),
         jnp.ones((B, 1), jnp.float32), jnp.zeros((B, pad_cols), jnp.float32)], axis=-1)

    block_b, B_pad = _choose_batch_tile(B)
    if B_pad != B:
        xa = jnp.pad(xa, ((0, B_pad - B), (0, 0)))   # padded rows are discarded below
    grid = (B_pad // block_b,)

    out = pl.pallas_call(
        partial(_encoder_kernel, latent_dim=L),
        out_shape=jax.ShapeDtypeStruct((B_pad, 3 * L), jnp.float32),
        grid_spec=pltpu.PrefetchScalarGridSpec(
            num_scalar_prefetch=0,
            grid=grid,
            in_specs=[
                pl.BlockSpec((block_b, aug), lambda i: (i, 0)),        # augmented x
                pl.BlockSpec((aug, LANES), lambda i: (0, 0)),          # w1 (resident)
                pl.BlockSpec((3, LANES, LANES), lambda i: (0, 0, 0)),  # w2/w3/head (resident)
            ],
            out_specs=pl.BlockSpec((block_b, 3 * L), lambda i: (i, 0)),
        ),
        compiler_params=pltpu.CompilerParams(
            dimension_semantics=("parallel",)),  # shard batch blocks across TCs (v7x)
    )(xa, w1_p, w_rest)

    out = out[:B]
    mu = out[:, :L]
    logvar = out[:, L:2 * L]
    z = out[:, 2 * L:3 * L]
    return z, logvar, mu


def init_linear(key, fan_in, fan_out):
    """PyTorch nn.Linear default init: U(-1/sqrt(fan_in), 1/sqrt(fan_in)).
    Weight returned as (in, out) (transposed vs PyTorch's (out, in))."""
    kw, kb = jax.random.split(key)
    bound = 1.0 / math.sqrt(fan_in)
    w = jax.random.uniform(kw, (fan_in, fan_out), jnp.float32, -bound, bound)
    b = jax.random.uniform(kb, (1, fan_out), jnp.float32, -bound, bound)
    return w, b


if __name__ == "__main__":
    # Small config consistent with the module's __init__:
    input_size = 24      # config.input_dim
    hidden_dim = 8       # config.hidden_dim
    latent_dim = 4       # config.latent_dim
    batch_size = 8       # config.batch_size
    input_dim = input_size + hidden_dim                          # 32
    d1, d2, d3 = input_dim // 2, input_dim // 4, input_dim // 8  # 16, 8, 4

    key = jax.random.PRNGKey(0)
    keys = jax.random.split(key, 7)

    w1, b1 = init_linear(keys[0], input_dim, d1)
    w2, b2 = init_linear(keys[1], d1, d2)
    w3, b3 = init_linear(keys[2], d2, d3)
    wmu, bmu = init_linear(keys[3], d3, latent_dim)
    wlv, blv = init_linear(keys[4], d3, latent_dim)
    params = (w1, b1, w2, b2, w3, b3, wmu, bmu, wlv, blv)

    # One-time parameter packing (hoisted to model-load time in practice).
    packed = pack_params(params, input_size=input_size, hidden_dim=hidden_dim,
                         latent_dim=latent_dim)

    x = jax.random.normal(keys[5], (batch_size, input_size), jnp.float32)
    # eps ~ N(0,1) (torch.randn_like(std)), supplied from the host so the check is
    # exact; could instead be drawn in-kernel with pltpu.prng_seed/stateful_normal.
    eps = jax.random.normal(keys[6], (batch_size, latent_dim), jnp.float32)

    z, logvar, mu = encoder_forward(x, eps, packed, latent_dim=latent_dim)
    jax.block_until_ready((z, logvar, mu))

    # Pure-JAX reference (exactly the original module's math, incl. the zero concat).
    x_cat = jnp.concatenate([x, jnp.zeros((batch_size, hidden_dim), jnp.float32)], -1)
    h = jnp.maximum(x_cat @ w1 + b1, 0.0)
    h = jnp.maximum(h @ w2 + b2, 0.0)
    h = jnp.maximum(h @ w3 + b3, 0.0)
    mu_ref = h @ wmu + bmu
    lv_ref = h @ wlv + blv
    z_ref = jnp.exp(0.5 * lv_ref) * eps + mu_ref
    assert jnp.allclose(mu, mu_ref, atol=2e-5), "mu mismatch"
    assert jnp.allclose(logvar, lv_ref, atol=2e-5), "logvar mismatch"
    assert jnp.allclose(z, z_ref, atol=2e-5), "z mismatch"

    print("KERNEL_OK")
</pallas_src>

<mosaic_0001>
module attributes {stable_mosaic.version = 11 : i64} {
  func.func @_encoder_kernel(%arg0: i32, %arg1: memref<8x32xf32, #tpu.memory_space<vmem>>, %arg2: memref<32x128xf32, #tpu.memory_space<vmem>>, %arg3: memref<3x128x128xf32, #tpu.memory_space<vmem>>, %arg4: memref<8x12xf32, #tpu.memory_space<vmem>>) attributes {dimension_semantics = [#tpu.dimension_semantics<parallel>], iteration_bounds = array<i64: 1>, scalar_prefetch = 0 : i64, scratch_operands = 0 : i64, tpu.core_type = #tpu.core_type<tc>, window_params = [{transform_indices = @transform_0, window_bounds = array<i64: 8, 32>}, {pipeline_mode = #tpu.pipeline_mode<synchronous>, transform_indices = @transform_1, window_bounds = array<i64: 32, 128>}, {pipeline_mode = #tpu.pipeline_mode<synchronous>, transform_indices = @transform_2, window_bounds = array<i64: 3, 128, 128>}, {transform_indices = @transform_3, window_bounds = array<i64: 8, 12>}]} {
    %c0 = arith.constant 0 : index
    %c0_0 = arith.constant 0 : index
    %0 = vector.load %arg1[%c0, %c0_0] : memref<8x32xf32, #tpu.memory_space<vmem>>, vector<8x32xf32>
    %c0_1 = arith.constant 0 : index
    %c0_2 = arith.constant 0 : index
    %1 = vector.load %arg2[%c0_1, %c0_2] : memref<32x128xf32, #tpu.memory_space<vmem>>, vector<32x128xf32>
    %cst = arith.constant dense<0.000000e+00> : vector<8x128xf32>
    %2 = tpu.matmul %0, %1, %cst {dimension_numbers = #tpu.dot_dimension_numbers<[1], [0], [0], [1], [0, 0, 1, 1], [], []>} : vector<8x32xf32>, vector<32x128xf32>, vector<8x128xf32> -> vector<8x128xf32>
    %cst_3 = arith.constant 0.000000e+00 : f32
    %3 = vector.broadcast %cst_3 : f32 to vector<8x128xf32>
    %4 = arith.maximumf %2, %3 : vector<8x128xf32>
    %c0_4 = arith.constant 0 : index
    %c0_5 = arith.constant 0 : index
    %c0_6 = arith.constant 0 : index
    %5 = vector.load %arg3[%c0_4, %c0_5, %c0_6] : memref<3x128x128xf32, #tpu.memory_space<vmem>>, vector<1x128x128xf32>
    %6 = vector.shape_cast %5 : vector<1x128x128xf32> to vector<128x128xf32>
    %cst_7 = arith.constant dense<0.000000e+00> : vector<8x128xf32>
    %7 = tpu.matmul %4, %6, %cst_7 {dimension_numbers = #tpu.dot_dimension_numbers<[1], [0], [0], [1], [0, 0, 1, 1], [], []>} : vector<8x128xf32>, vector<128x128xf32>, vector<8x128xf32> -> vector<8x128xf32>
    %cst_8 = arith.constant 0.000000e+00 : f32
    %8 = vector.broadcast %cst_8 : f32 to vector<8x128xf32>
    %9 = arith.maximumf %7, %8 : vector<8x128xf32>
    %c1 = arith.constant 1 : index
    %c0_9 = arith.constant 0 : index
    %c0_10 = arith.constant 0 : index
    %10 = vector.load %arg3[%c1, %c0_9, %c0_10] : memref<3x128x128xf32, #tpu.memory_space<vmem>>, vector<1x128x128xf32>
    %11 = vector.shape_cast %10 : vector<1x128x128xf32> to vector<128x128xf32>
    %cst_11 = arith.constant dense<0.000000e+00> : vector<8x128xf32>
    %12 = tpu.matmul %9, %11, %cst_11 {dimension_numbers = #tpu.dot_dimension_numbers<[1], [0], [0], [1], [0, 0, 1, 1], [], []>} : vector<8x128xf32>, vector<128x128xf32>, vector<8x128xf32> -> vector<8x128xf32>
    %cst_12 = arith.constant 0.000000e+00 : f32
    %13 = vector.broadcast %cst_12 : f32 to vector<8x128xf32>
    %14 = arith.maximumf %12, %13 : vector<8x128xf32>
    %c2 = arith.constant 2 : index
    %c0_13 = arith.constant 0 : index
    %c0_14 = arith.constant 0 : index
    %15 = vector.load %arg3[%c2, %c0_13, %c0_14] : memref<3x128x128xf32, #tpu.memory_space<vmem>>, vector<1x128x128xf32>
    %16 = vector.shape_cast %15 : vector<1x128x128xf32> to vector<128x128xf32>
    %cst_15 = arith.constant dense<0.000000e+00> : vector<8x128xf32>
    %17 = tpu.matmul %14, %16, %cst_15 {dimension_numbers = #tpu.dot_dimension_numbers<[1], [0], [0], [1], [0, 0, 1, 1], [], []>} : vector<8x128xf32>, vector<128x128xf32>, vector<8x128xf32> -> vector<8x128xf32>
    %18 = vector.extract_strided_slice %17 {offsets = [0, 0], sizes = [8, 4], strides = [1, 1]} : vector<8x128xf32> to vector<8x4xf32>
    %19 = vector.extract_strided_slice %17 {offsets = [0, 4], sizes = [8, 4], strides = [1, 1]} : vector<8x128xf32> to vector<8x4xf32>
    %20 = vector.extract_strided_slice %0 {offsets = [0, 0], sizes = [8, 4], strides = [1, 1]} : vector<8x32xf32> to vector<8x4xf32>
    %cst_16 = arith.constant 5.000000e-01 : f32
    %21 = vector.broadcast %cst_16 : f32 to vector<8x4xf32>
    %22 = arith.mulf %21, %19 : vector<8x4xf32>
    %23 = math.exp %22 : vector<8x4xf32>
    %24 = arith.mulf %23, %20 : vector<8x4xf32>
    %25 = arith.addf %24, %18 : vector<8x4xf32>
    %26 = vector.extract_strided_slice %17 {offsets = [0, 0], sizes = [8, 8], strides = [1, 1]} : vector<8x128xf32> to vector<8x8xf32>
    %c0_17 = arith.constant 0 : index
    %c0_18 = arith.constant 0 : index
    %27 = vector.load %arg4[%c0_17, %c0_18] : memref<8x12xf32, #tpu.memory_space<vmem>>, vector<8x8xf32>
    tpu.vector_store %arg4[%c0_17, %c0_18], %26 {strides = array<i32>} : memref<8x12xf32, #tpu.memory_space<vmem>>, vector<8x8xf32>,
    %c0_19 = arith.constant 0 : index
    %c8 = arith.constant 8 : index
    %28 = vector.load %arg4[%c0_19, %c8] : memref<8x12xf32, #tpu.memory_space<vmem>>, vector<8x4xf32>
    tpu.vector_store %arg4[%c0_19, %c8], %25 {strides = array<i32>} : memref<8x12xf32, #tpu.memory_space<vmem>>, vector<8x4xf32>,
    return
  }
  func.func @transform_0(%arg0: i32) -> (i32, i32) {
    %c0_i32 = arith.constant 0 : i32
    %c0_i32_0 = arith.constant 0 : i32
    return %arg0, %c0_i32 : i32, i32
  }
  func.func @transform_1(%arg0: i32) -> (i32, i32) {
    %c0_i32 = arith.constant 0 : i32
    %c0_i32_0 = arith.constant 0 : i32
    %c0_i32_1 = arith.constant 0 : i32
    return %c0_i32, %c0_i32_0 : i32, i32
  }
  func.func @transform_2(%arg0: i32) -> (i32, i32, i32) {
    %c0_i32 = arith.constant 0 : i32
    %c0_i32_0 = arith.constant 0 : i32
    %c0_i32_1 = arith.constant 0 : i32
    %c0_i32_2 = arith.constant 0 : i32
    return %c0_i32, %c0_i32_0, %c0_i32_1 : i32, i32, i32
  }
  func.func @transform_3(%arg0: i32) -> (i32, i32) {
    %c0_i32 = arith.constant 0 : i32
    %c0_i32_0 = arith.constant 0 : i32
    return %arg0, %c0_i32 : i32, i32
  }
}

</mosaic_0001>

<bundles_post_ra>
// kernel: tpu_custom_call.1
= control target key start
LH: loop header
LB: loop body
LE: loop exit
PB: predicated region body
PF: predicated region fallthrough
CT: control target
= control target key end

     0   :  { %8 = vsyncpa [#allocation3], 0  ;;  %s807_s0 = inlined_call_operand.hbm [shape: f32[8,32], index: 0, kind: input, shape index: {}]   ;;  %s808_s1 = inlined_call_operand.hbm [shape: f32[32,128], index: 1, kind: input, shape index: {}]   ;;  %s809_s2 = inlined_call_operand.hbm [shape: f32[3,128,128], index: 2, kind: input, shape index: {}]   ;;  %s810_s3 = inlined_call_operand.hbm [shape: f32[8,12], index: 3, kind: output, shape index: {}]  }
   0x1   :  { %9 = vsyncpa [#allocation6], 0 }
   0x2   :  { %10 = vsyncpa [#allocation4], 0  ;;  %s702_s12 = smov [#allocation5]  }
   0x3   :  { %s26_s13 = sshll.u32 %s702_s12, 4  ;;  %s27_s13 = int_to_ptr.vmem [resolvable:$true] %s26_s13 }
   0x4   :  { %s624_s14 = scalar_lea.vmem %s27_s13, 512  ;;  %p629_p1 = scmp.lt.s32.totalorder %s27_s13, %s27_s13 }
   0x5   :  { %p625_p0 = scmp.ne.s32.totalorder %s27_s13, %s624_s14  ;;  %p630_p2 = scmp.lt.s32.totalorder %s624_s14, %s624_s14 }
   0x7   :  { %p631_p3 = por %p630_p2, %p629_p1 }
   0x9   :  { %p632_p4 = pnand %p631_p3, %p625_p0 }
   0xb   :  { %635 = shalt.err (!%p632_p4)
}
   0xc   :  { %s703_s15 = smov 128   ;;  %s704_s16 = smov 8  }
   0xd   :  { %32 = dma.hbm_to_vmem [thread:$0]  %s808_s1, 512, %s27_s13, [#allocation6], %s703_s15, %s703_s15, %s704_s16  }
   0xe   :  { %s705_s19 = smov [#allocation2]   ;;  %s706_s21 = smov [#allocation7]  }
   0xf   :  { %s17_s20 = sshll.u32 %s705_s19, 4  ;;  %s38_s22 = sshll.u32 %s706_s21, 4  ;;  %s18_s20 = int_to_ptr.vmem [resolvable:$true] %s17_s20  ;;  %s39_s22 = int_to_ptr.vmem [resolvable:$true] %s38_s22 }
  0x10   :  { %s644_s23 = scalar_lea.vmem %s18_s20, 128  ;;  %p649_p6 = scmp.lt.s32.totalorder %s18_s20, %s18_s20 }
  0x11   :  { %p645_p5 = scmp.ne.s32.totalorder %s18_s20, %s644_s23  ;;  %p650_p7 = scmp.lt.s32.totalorder %s644_s23, %s644_s23 }
  0x13   :  { %p651_p8 = por %p650_p7, %p649_p6 }
  0x15   :  { %p652_p9 = pnand %p651_p8, %p645_p5 }
  0x17   :  { %655 = shalt.err (!%p652_p9)
}
  0x18   :  { %20 = dma.hbm_to_vmem [thread:$0]  %s807_s0, 128, %s18_s20, [#allocation3]  }
  0x19   :  { %s664_s26 = scalar_lea.vmem %s39_s22, 6144  ;;  %p669_p11 = scmp.lt.s32.totalorder %s39_s22, %s39_s22 }
  0x1a   :  { %p665_p10 = scmp.ne.s32.totalorder %s39_s22, %s664_s26  ;;  %p670_p12 = scmp.lt.s32.totalorder %s664_s26, %s664_s26 }
  0x1c   :  { %p671_p13 = por %p670_p12, %p669_p11 }
  0x1e   :  { %p672_p0 = pnand %p671_p13, %p665_p10 }
  0x20   :  { %675 = shalt.err (!%p672_p0)
}
  0x21   :  { %44 = dma.hbm_to_vmem [thread:$0]  %s809_s2, 6144, %s39_s22, [#allocation6], %s703_s15, %s703_s15, %s704_s16  }
  0x22   :  { %696 = dma.done.wait [#allocation3], 128  }
  0x23   :  { %697 = vsyncadd [#allocation3], 4294967168 }
  0x24   :  { %698 = dma.done.wait [#allocation6], 6656  }
  0x25   :  { %699 = vsyncadd [#allocation6], 4294960640  ;;  %v707_v0 = vmov 0.0   ;;  %vm708_vm0 = vmmov 0   ;;  %v58_v1 = vld [vmem:[#allocation5 + $0x18] sm:$0xff]  ;;  %v57_v2 = vld [vmem:[#allocation5 + $0x10] sm:$0xff] }
  0x26   :  { %489 = vmatprep.subr.mxu0 %v707_v0  ;;  %497 = vmatprep.mubr.msk.f32.mxu0 %vm708_vm0, %v707_v0  ;;  %v149_v3 = vld [vmem:[#allocation7 + $0x78] sm:$0xff]  ;;  %v56_v4 = vld [vmem:[#allocation5 + $0x8] sm:$0xff]  ;;  %v148_v5 = vld [vmem:[#allocation7 + $0x70] sm:$0xff]  ;;  %vm59_vm1 = vcmask 261120   ;;  %s709_s0 = smov 4   ;;  %vm408_vm2 = vcmask 64512  }
  0x27   :  { %500 = vmatprep.subr.mxu1 %v707_v0  ;;  %532 = vmatprep.mubr.msk.f32.mxu1 %vm708_vm0, %v707_v0  ;;  %v147_v6 = vld [vmem:[#allocation7 + $0x68] sm:$0xff]  ;;  %v55_v7 = vld [vmem:[#allocation5] sm:$0xff]  ;;  %v749_v8 = vld [vmem:[#allocation2] sm:$0xff]  ;;  %s710_s2 = smov [#allocation8]   ;;  %vm414_vm3 = vcmask 97344  }
  0x28   :  { %490 = vmatpush3.msra.mxu0 %v58_v1  ;;  %501 = vmatpush3.msra.mxu1 %v149_v3  ;;  %v146_v9 = vld [vmem:[#allocation7 + $0x60] sm:$0xff]  ;;  %v145_v10 = vld [vmem:[#allocation7 + $0x58] sm:$0xff]  ;;  %v144_v11 = vld [vmem:[#allocation7 + $0x50] sm:$0xff]  ;;  %s422_s28 = sshll.u32 %s710_s2, 4  ;;  %s423_s28 = int_to_ptr.vmem [resolvable:$true] %s422_s28 }
  0x29   :  { %491 = vmatprep.subr.mxu0 %v707_v0  ;;  %502 = vmatprep.subr.mxu1 %v707_v0  ;;  %v143_v12 = vld [vmem:[#allocation7 + $0x48] sm:$0xff]  ;;  %v142_v13 = vld [vmem:[#allocation7 + $0x40] sm:$0xff]  ;;  %v141_v14 = vld [vmem:[#allocation7 + $0x38] sm:$0xff]  ;;  %s676_s29 = scalar_lea.vmem %s423_s28, 128  ;;  %p681_p2 = scmp.lt.s32.totalorder %s423_s28, %s423_s28 }
  0x2a   :  { %492 = vmatpush3.msra.mxu0 %v57_v2  ;;  %503 = vmatpush3.msra.mxu1 %v148_v5  ;;  %v140_v15 = vld [vmem:[#allocation7 + $0x30] sm:$0xff]  ;;  %v139_v16 = vld [vmem:[#allocation7 + $0x28] sm:$0xff]  ;;  %v138_v17 = vld [vmem:[#allocation7 + $0x20] sm:$0xff]  ;;  %p677_p1 = scmp.ne.s32.totalorder %s423_s28, %s676_s29  ;;  %p682_p3 = scmp.lt.s32.totalorder %s676_s29, %s676_s29 }
  0x2b   :  { %493 = vmatprep.subr.mxu0 %v707_v0  ;;  %504 = vmatprep.subr.mxu1 %v707_v0  ;;  %v137_v18 = vld [vmem:[#allocation7 + $0x18] sm:$0xff]  ;;  %v136_v19 = vld [vmem:[#allocation7 + $0x10] sm:$0xff]  ;;  %v135_v20 = vld [vmem:[#allocation7 + $0x8] sm:$0xff] }
  0x2c   :  { %494 = vmatpush3.msra.mxu0 %v56_v4  ;;  %505 = vmatpush3.msra.mxu1 %v147_v6  ;;  %v134_v21 = vld [vmem:[#allocation7] sm:$0xff]  ;;  %v237_v22 = vld [vmem:[#allocation7 + $0xf8] sm:$0xff]  ;;  %v236_v23 = vld [vmem:[#allocation7 + $0xf0] sm:$0xff]  ;;  %p683_p4 = por %p682_p3, %p681_p2 }
  0x2d   :  { %495 = vmatprep.subr.mxu0 %v707_v0  ;;  %506 = vmatprep.subr.mxu1 %v707_v0  ;;  %v235_v24 = vld [vmem:[#allocation7 + $0xe8] sm:$0xff]  ;;  %v234_v25 = vld [vmem:[#allocation7 + $0xe0] sm:$0xff]  ;;  %v233_v26 = vld [vmem:[#allocation7 + $0xd8] sm:$0xff] }
  0x2e   :  { %496 = vmatpush3.msra.mxu0 %v55_v7  ;;  %507 = vmatpush3.msra.mxu1 %v146_v9  ;;  %v232_v27 = vld [vmem:[#allocation7 + $0xd0] sm:$0xff]  ;;  %v231_v28 = vld [vmem:[#allocation7 + $0xc8] sm:$0xff]  ;;  %v230_v29 = vld [vmem:[#allocation7 + $0xc0] sm:$0xff]  ;;  %p684_p5 = pnand %p683_p4, %p677_p1 }
  0x2f   :  { %498 = vmatmul.mubr.msk.f32.vlgmr.msra.gmra.mxu0 %vm59_vm1, %v749_v8  ;;  %508 = vmatprep.subr.mxu1 %v707_v0  ;;  %v229_v30 = vld [vmem:[#allocation7 + $0xb8] sm:$0xff]  ;;  %v228_v31 = vld [vmem:[#allocation7 + $0xb0] sm:$0xff]  ;;  %v227_v32 = vld [vmem:[#allocation7 + $0xa8] sm:$0xff] }
  0x30   :  { %535 = vmatprep.subr.mxu0 %v707_v0  ;;  %509 = vmatpush3.msra.mxu1 %v145_v10  ;;  %v226_v33 = vld [vmem:[#allocation7 + $0xa0] sm:$0xff]  ;;  %v225_v34 = vld [vmem:[#allocation7 + $0x98] sm:$0xff]  ;;  %v224_v35 = vld [vmem:[#allocation7 + $0x90] sm:$0xff] }
  0x31   :  { %567 = vmatprep.mubr.msk.f32.mxu0 %vm708_vm0, %v707_v0  ;;  %510 = vmatprep.subr.mxu1 %v707_v0  ;;  %v223_v39 = vld [vmem:[#allocation7 + $0x88] sm:$0xff]  ;;  %v222_v40 = vld [vmem:[#allocation7 + $0x80] sm:$0xff]  ;;  %v325_v41 = vld [vmem:[#allocation7 + $0x178] sm:$0xff] }
  0x32   :  { %511 = vmatpush3.msra.mxu1 %v144_v11  ;;  %536 = vmatpush3.msra.mxu0 %v237_v22  ;;  %v324_v42 = vld [vmem:[#allocation7 + $0x170] sm:$0xff]  ;;  %v323_v43 = vld [vmem:[#allocation7 + $0x168] sm:$0xff]  ;;  %v322_v44 = vld [vmem:[#allocation7 + $0x160] sm:$0xff] }
  0x33   :  { %512 = vmatprep.subr.mxu1 %v707_v0  ;;  %537 = vmatprep.subr.mxu0 %v707_v0  ;;  %v321_v45 = vld [vmem:[#allocation7 + $0x158] sm:$0xff]  ;;  %v320_v46 = vld [vmem:[#allocation7 + $0x150] sm:$0xff]  ;;  %v319_v47 = vld [vmem:[#allocation7 + $0x148] sm:$0xff] }
  0x34   :  { %513 = vmatpush3.msra.mxu1 %v143_v12  ;;  %538 = vmatpush3.msra.mxu0 %v236_v23  ;;  %v318_v48 = vld [vmem:[#allocation7 + $0x140] sm:$0xff]  ;;  %v317_v49 = vld [vmem:[#allocation7 + $0x138] sm:$0xff]  ;;  %v316_v50 = vld [vmem:[#allocation7 + $0x130] sm:$0xff] }
  0x35   :  { %514 = vmatprep.subr.mxu1 %v707_v0  ;;  %539 = vmatprep.subr.mxu0 %v707_v0  ;;  %v315_v51 = vld [vmem:[#allocation7 + $0x128] sm:$0xff]  ;;  %v314_v52 = vld [vmem:[#allocation7 + $0x120] sm:$0xff]  ;;  %v313_v53 = vld [vmem:[#allocation7 + $0x118] sm:$0xff] }
  0x36   :  { %515 = vmatpush3.msra.mxu1 %v142_v13  ;;  %540 = vmatpush3.msra.mxu0 %v235_v24  ;;  %v312_v54 = vld [vmem:[#allocation7 + $0x110] sm:$0xff]  ;;  %v311_v58 = vld [vmem:[#allocation7 + $0x108] sm:$0xff]  ;;  %v310_v59 = vld [vmem:[#allocation7 + $0x100] sm:$0xff] }
  0x37   :  { %516 = vmatprep.subr.mxu1 %v707_v0  ;;  %541 = vmatprep.subr.mxu0 %v707_v0 }
  0x38   :  { %517 = vmatpush3.msra.mxu1 %v141_v14  ;;  %542 = vmatpush3.msra.mxu0 %v234_v25 }
  0x39   :  { %518 = vmatprep.subr.mxu1 %v707_v0  ;;  %543 = vmatprep.subr.mxu0 %v707_v0 }
  0x3a   :  { %519 = vmatpush3.msra.mxu1 %v140_v15  ;;  %544 = vmatpush3.msra.mxu0 %v233_v26 }
  0x3b   :  { %520 = vmatprep.subr.mxu1 %v707_v0  ;;  %545 = vmatprep.subr.mxu0 %v707_v0 }
  0x3c   :  { %521 = vmatpush3.msra.mxu1 %v139_v16  ;;  %546 = vmatpush3.msra.mxu0 %v232_v27 }
  0x3d   :  { %522 = vmatprep.subr.mxu1 %v707_v0  ;;  %547 = vmatprep.subr.mxu0 %v707_v0 }
  0x3e   :  { %523 = vmatpush3.msra.mxu1 %v138_v17  ;;  %548 = vmatpush3.msra.mxu0 %v231_v28 }
  0x3f   :  { %524 = vmatprep.subr.mxu1 %v707_v0  ;;  %549 = vmatprep.subr.mxu0 %v707_v0 }
  0x40   :  { %525 = vmatpush3.msra.mxu1 %v137_v18  ;;  %550 = vmatpush3.msra.mxu0 %v230_v29 }
  0x41   :  { %526 = vmatprep.subr.mxu1 %v707_v0  ;;  %551 = vmatprep.subr.mxu0 %v707_v0 }
  0x42   :  { %527 = vmatpush3.msra.mxu1 %v136_v19  ;;  %552 = vmatpush3.msra.mxu0 %v229_v30 }
  0x43   :  { %528 = vmatprep.subr.mxu1 %v707_v0  ;;  %553 = vmatprep.subr.mxu0 %v707_v0 }
  0x44   :  { %529 = vmatpush3.msra.mxu1 %v135_v20  ;;  %554 = vmatpush3.msra.mxu0 %v228_v31 }
  0x45   :  { %530 = vmatprep.subr.mxu1 %v707_v0  ;;  %555 = vmatprep.subr.mxu0 %v707_v0 }
  0x46   :  { %531 = vmatpush3.msra.mxu1 %v134_v21  ;;  %556 = vmatpush3.msra.mxu0 %v227_v32 }
  0x47   :  { %570 = vmatprep.subr.mxu1 %v707_v0  ;;  %557 = vmatprep.subr.mxu0 %v707_v0 }
  0x48   :  { %558 = vmatpush3.msra.mxu0 %v226_v33  ;;  %399 = vrot.lane.b32.xlu0 %v749_v8, %s709_s0 }
  0x49   :  { %559 = vmatprep.subr.mxu0 %v707_v0 }
  0x4a   :  { %560 = vmatpush3.msra.mxu0 %v225_v34 }
  0x4b   :  { %561 = vmatprep.subr.mxu0 %v707_v0 }
  0x4c   :  { %562 = vmatpush3.msra.mxu0 %v224_v35 }
  0x4d   :  { %563 = vmatprep.subr.mxu0 %v707_v0 }
  0x4e   :  { %564 = vmatpush3.msra.mxu0 %v223_v39 }
  0x4f   :  { %565 = vmatprep.subr.mxu0 %v707_v0 }
  0x50   :  { %566 = vmatpush3.msra.mxu0 %v222_v40 }
  0xba   :  { %v400_v5 = vpop.permute.xlu0 %399 }
  0xef   :  { %v129_v36 = vpop.f32.mrf.mxu0 }
  0xf0   :  { %v133_v37 = vmax.f32 %v129_v36, 0.0 }
  0xf1   :  { %v499_v38 = vpop.f32.mrf.mxu0 }
  0xf2   :  { %533 = vmatmul.mubr.f32.vlgmr.msra.gmra.mxu1 %v133_v37 }
  0xf3   :  { %602 = vmatprep.mubr.msk.f32.mxu1 %vm708_vm0, %v707_v0  ;;  %571 = vmatpush3.msra.mxu1 %v325_v41 }
  0xf4   :  { %572 = vmatprep.subr.mxu1 %v707_v0 }
  0xf5   :  { %573 = vmatpush3.msra.mxu1 %v324_v42 }
  0xf6   :  { %574 = vmatprep.subr.mxu1 %v707_v0 }
  0xf7   :  { %575 = vmatpush3.msra.mxu1 %v323_v43 }
  0xf8   :  { %576 = vmatprep.subr.mxu1 %v707_v0 }
  0xf9   :  { %577 = vmatpush3.msra.mxu1 %v322_v44 }
  0xfa   :  { %578 = vmatprep.subr.mxu1 %v707_v0 }
  0xfb   :  { %579 = vmatpush3.msra.mxu1 %v321_v45 }
  0xfc   :  { %580 = vmatprep.subr.mxu1 %v707_v0 }
  0xfd   :  { %581 = vmatpush3.msra.mxu1 %v320_v46 }
  0xfe   :  { %582 = vmatprep.subr.mxu1 %v707_v0 }
  0xff   :  { %583 = vmatpush3.msra.mxu1 %v319_v47 }
 0x100   :  { %584 = vmatprep.subr.mxu1 %v707_v0 }
 0x101   :  { %585 = vmatpush3.msra.mxu1 %v318_v48 }
 0x102   :  { %586 = vmatprep.subr.mxu1 %v707_v0 }
 0x103   :  { %587 = vmatpush3.msra.mxu1 %v317_v49 }
 0x104   :  { %588 = vmatprep.subr.mxu1 %v707_v0 }
 0x105   :  { %589 = vmatpush3.msra.mxu1 %v316_v50 }
 0x106   :  { %590 = vmatprep.subr.mxu1 %v707_v0 }
 0x107   :  { %591 = vmatpush3.msra.mxu1 %v315_v51 }
 0x108   :  { %592 = vmatprep.subr.mxu1 %v707_v0 }
 0x109   :  { %593 = vmatpush3.msra.mxu1 %v314_v52 }
 0x10a   :  { %594 = vmatprep.subr.mxu1 %v707_v0 }
 0x10b   :  { %595 = vmatpush3.msra.mxu1 %v313_v53 }
 0x10c   :  { %596 = vmatprep.subr.mxu1 %v707_v0 }
 0x10d   :  { %597 = vmatpush3.msra.mxu1 %v312_v54 }
 0x10e   :  { %598 = vmatprep.subr.mxu1 %v707_v0 }
 0x10f   :  { %599 = vmatpush3.msra.mxu1 %v311_v58 }
 0x110   :  { %600 = vmatprep.subr.mxu1 %v707_v0 }
 0x111   :  { %601 = vmatpush3.msra.mxu1 %v310_v59 }
 0x1b2   :  { %v216_v55 = vpop.f32.mrf.mxu1 }
 0x1b3   :  { %v220_v56 = vmax.f32 %v216_v55, 0.0 }
 0x1b4   :  { %v534_v57 = vpop.f32.mrf.mxu1 }
 0x1b5   :  { %568 = vmatmul.mubr.f32.vlgmr.msra.gmra.mxu0 %v220_v56 }
 0x275   :  { %v304_v60 = vpop.f32.mrf.mxu0 }
 0x276   :  { %v308_v61 = vmax.f32 %v304_v60, 0.0 }
 0x277   :  { %v569_v62 = vpop.f32.mrf.mxu0 }
 0x278   :  { %603 = vmatmul.mubr.f32.vlgmr.msra.gmra.mxu1 %v308_v61 }
 0x338   :  { %v392_v63 = vpop.f32.mrf.mxu1 }
 0x339   :  { %409 = vst.msk [vmem:[#allocation8] sm:$0xff] %vm408_vm2, %v392_v63  ;;  %404 = vrot.lane.b32.xlu0 %v392_v63, %s709_s0  ;;  %v396_v2 = vmul.f32 0.5, %v392_v63 }
 0x33a   :  { %v604_v1 = vpop.f32.mrf.mxu1 }
 0x33b   :  { %v397_v3 = vmul.f32 1.442695, %v396_v2 }
 0x33d   :  { %614 = vpow2.f32 %v397_v3 }
 0x34a   :  { %v615_v4 = vpop.eup %614 }
 0x34b   :  { %v402_v0 = vmul.f32 %v615_v4, %v400_v5 }
 0x3ab   :  { %v405_v6 = vpop.permute.xlu0 %404 }
 0x3ac   :  { %v407_v7 = vadd.f32 %v405_v6, %v402_v0 }
 0x3ae   :  { %411 = vrot.lane.b32.xlu1 %v407_v7, %s709_s0 }
 0x420   :  { %v412_v8 = vpop.permute.xlu1 %411 }
 0x421   :  { %415 = vst.msk [vmem:[#allocation8] sm:$0xff] %vm414_vm3, %v412_v8 }
 0x422   :  { %687 = shalt.err (!%p684_p5)
}
 0x423   :  { %425 = dma.vmem_to_hbm [thread:$0]  %s423_s28, 128, %s810_s3, [#allocation4]  }
 0x424   :  { %700 = dma.done.wait [#allocation4], 128  }
 0x425   :  { %701 = vsyncadd [#allocation4], 4294967168 }
 0x426   :  { %429 = vsyncpa [#allocation3], 1 }
 0x427   :  { %430 = vsyncpa [#allocation6], 1 }
 0x428   :  { %431 = vsyncpa [#allocation4], 1 }

</bundles_post_ra>
